<compile_context>
chip_gen: v7x
topology: tpu7x:2x2x1
jax: 0.10.0
libtpu: 0.0.40
codegen_flags: <defaults>
</compile_context>

<pallas_src>
import functools

import jax
import jax.numpy as jnp
from jax.experimental import pallas as pl
from jax.experimental.pallas import tpu as pltpu


def simple_nn_kernel(x_ref, w1_ref, b1_ref, w2_ref, b2_ref, o_ref):
    # fc1 on the MXU: (tb, 10) @ (10, 50) -> (tb, 50), f32 accumulation.
    h = jnp.dot(x_ref[...], w1_ref[...], preferred_element_type=jnp.float32)
    # Bias add + ReLU on the VPU (f32: v5e VPU/EUP have no bf16).
    h = jnp.maximum(h + b1_ref[...], 0.0)

    # fc2: contract the hidden dim of the (1, 50) w2 row against the hidden dim
    # of h -> (1, tb).  The result is produced lane-dense by construction, so
    # the store below is a plain unmasked row store (no (tb, 1) column layout).
    y = jax.lax.dot_general(
        w2_ref[...], h,
        dimension_numbers=(((1,), (1,)), ((), ())),
        preferred_element_type=jnp.float32)

    # Scalar bias from SMEM + sigmoid (EUP), lane-dense store.
    o_ref[...] = jax.nn.sigmoid(y + b2_ref[0, 0]).astype(o_ref.dtype)


@functools.partial(jax.jit, static_argnames=("tb",))
def simple_nn(x, w1, b1, w2, b2, *, tb=2048):
    """Forward pass of SimpleNN.  Returns (B, 1) float32."""
    B, d_in = x.shape
    d_hid = w1.shape[1]

    # --- batch tile selection --------------------------------------------
    if tb >= B:
        # Single whole-array tile: block dims equal the full array dims, so any
        # B (even non-multiples of 8) is legal without padding.
        tb_eff = B
    else:
        # Multi-tile grid: keep tb a multiple of 128 so the (1, tb) output
        # blocks are lane-aligned; the ragged tail x block is handled by Pallas
        # (clipped DMA, garbage rows sliced off below).
        tb_eff = max(128, (tb // 128) * 128)
        if tb_eff >= B:
            tb_eff = B
    ntiles = pl.cdiv(B, tb_eff)
    out_cols = ntiles * tb_eff

    # --- operands (all f32; only cheap reshapes of the tiny parameters) ---
    x_f = jnp.asarray(x, jnp.float32)
    w1_f = jnp.asarray(w1, jnp.float32)
    b1_row = jnp.asarray(b1, jnp.float32).reshape(1, d_hid)
    w2_row = jnp.asarray(w2, jnp.float32).reshape(1, d_hid)  # (50,1) -> (1,50)
    b2_s = jnp.asarray(b2, jnp.float32).reshape(1, 1)

    flops = 2 * B * (d_in * d_hid + d_hid)
    bytes_accessed = (x_f.size * 4
                      + (w1_f.size + b1_row.size + w2_row.size + b2_s.size) * 4
                      + B * 4)

    out = pl.pallas_call(
        simple_nn_kernel,
        out_shape=jax.ShapeDtypeStruct((1, out_cols), jnp.float32),
        grid=(ntiles,),
        in_specs=[
            # x: one (tb, 10) tile per grid step (double-buffered by Pallas).
            pl.BlockSpec((tb_eff, d_in), lambda i: (i, 0),
                         memory_space=pltpu.MemorySpace.VMEM),
            # weights / bias rows: constant index_map -> resident across steps.
            pl.BlockSpec((d_in, d_hid), lambda i: (0, 0),
                         memory_space=pltpu.MemorySpace.VMEM),
            pl.BlockSpec((1, d_hid), lambda i: (0, 0),
                         memory_space=pltpu.MemorySpace.VMEM),
            pl.BlockSpec((1, d_hid), lambda i: (0, 0),
                         memory_space=pltpu.MemorySpace.VMEM),
            # b2: true scalar via SMEM.
            pl.BlockSpec(memory_space=pltpu.MemorySpace.SMEM),
        ],
        # Lane-dense (1, tb) output row per grid step.
        out_specs=pl.BlockSpec((1, tb_eff), lambda i: (0, i),
                               memory_space=pltpu.MemorySpace.VMEM),
        compiler_params=pltpu.CompilerParams(
            dimension_semantics=("parallel",),
        ),
        cost_estimate=pl.CostEstimate(
            flops=flops, transcendentals=B, bytes_accessed=bytes_accessed),
    )(x_f, w1_f, b1_row, w2_row, b2_s)

    # Drop the (garbage) tail columns of the ragged last tile, return (B, 1).
    return out.reshape(-1)[:B].reshape(B, 1)


def _reference(x, w1, b1, w2, b2):
    h = jnp.maximum(x @ w1 + jnp.asarray(b1, jnp.float32).reshape(1, -1), 0.0)
    y = h @ jnp.asarray(w2, jnp.float32) + jnp.asarray(b2, jnp.float32).reshape(1, 1)
    return jax.nn.sigmoid(y)


if __name__ == "__main__":
    key = jax.random.PRNGKey(0)
    kx, k1, k2, k3, k4, kx2 = jax.random.split(key, 6)

    D_IN, D_HID, D_OUT = 10, 50, 1

    # Deterministic synthetic parameters (not a checkpoint load).
    w1 = jax.random.normal(k1, (D_IN, D_HID), dtype=jnp.float32) * 0.1
    b1 = jax.random.normal(k2, (1, D_HID), dtype=jnp.float32) * 0.1
    w2 = jax.random.normal(k3, (D_HID, D_OUT), dtype=jnp.float32) * 0.1
    b2 = jax.random.normal(k4, (1, D_OUT), dtype=jnp.float32) * 0.1

    # Case 1: small batch, single whole-array tile (default tb).
    x_a = jax.random.normal(kx, (64, D_IN), dtype=jnp.float32)
    out_a = simple_nn(x_a, w1, b1, w2, b2)
    jax.block_until_ready(out_a)
    ref_a = _reference(x_a, w1, b1, w2, b2)
    assert out_a.shape == (64, D_OUT)
    assert jnp.allclose(out_a, ref_a, atol=1e-3, rtol=1e-3)

    # Case 2: ragged multi-tile grid (tb=128 -> 2 tiles, partial tail block).
    x_b = jax.random.normal(kx2, (200, D_IN), dtype=jnp.float32)
    out_b = simple_nn(x_b, w1, b1, w2, b2, tb=128)
    jax.block_until_ready(out_b)
    ref_b = _reference(x_b, w1, b1, w2, b2)
    assert out_b.shape == (200, D_OUT)
    assert jnp.allclose(out_b, ref_b, atol=1e-3, rtol=1e-3)

    print("KERNEL_OK")
</pallas_src>

<mosaic_0001>
module attributes {stable_mosaic.version = 11 : i64} {
  func.func @simple_nn_kernel(%arg0: i32, %arg1: memref<64x10xf32, #tpu.memory_space<vmem>>, %arg2: memref<10x50xf32, #tpu.memory_space<vmem>>, %arg3: memref<1x50xf32, #tpu.memory_space<vmem>>, %arg4: memref<1x50xf32, #tpu.memory_space<vmem>>, %arg5: memref<1x1xf32, #tpu.memory_space<smem>>, %arg6: memref<1x64xf32, #tpu.memory_space<vmem>>) attributes {dimension_semantics = [#tpu.dimension_semantics<parallel>], iteration_bounds = array<i64: 1>, scalar_prefetch = 0 : i64, scratch_operands = 0 : i64, tpu.core_type = #tpu.core_type<tc>, window_params = [{transform_indices = @transform_0, window_bounds = array<i64: 64, 10>}, {pipeline_mode = #tpu.pipeline_mode<synchronous>, transform_indices = @transform_1, window_bounds = array<i64: 10, 50>}, {pipeline_mode = #tpu.pipeline_mode<synchronous>, transform_indices = @transform_2, window_bounds = array<i64: 1, 50>}, {pipeline_mode = #tpu.pipeline_mode<synchronous>, transform_indices = @transform_3, window_bounds = array<i64: 1, 50>}, {transform_indices = @transform_4, window_bounds = array<i64: 1, 1>}, {transform_indices = @transform_5, window_bounds = array<i64: 1, 64>}]} {
    %c0 = arith.constant 0 : index
    %c0_0 = arith.constant 0 : index
    %0 = vector.load %arg1[%c0, %c0_0] : memref<64x10xf32, #tpu.memory_space<vmem>>, vector<64x10xf32>
    %c0_1 = arith.constant 0 : index
    %c0_2 = arith.constant 0 : index
    %1 = vector.load %arg2[%c0_1, %c0_2] : memref<10x50xf32, #tpu.memory_space<vmem>>, vector<10x50xf32>
    %cst = arith.constant dense<0.000000e+00> : vector<64x50xf32>
    %2 = tpu.matmul %0, %1, %cst {dimension_numbers = #tpu.dot_dimension_numbers<[1], [0], [0], [1], [0, 0, 1, 1], [], []>} : vector<64x10xf32>, vector<10x50xf32>, vector<64x50xf32> -> vector<64x50xf32>
    %c0_3 = arith.constant 0 : index
    %c0_4 = arith.constant 0 : index
    %3 = vector.load %arg3[%c0_3, %c0_4] : memref<1x50xf32, #tpu.memory_space<vmem>>, vector<1x50xf32>
    %4 = vector.broadcast %3 : vector<1x50xf32> to vector<64x50xf32>
    %5 = arith.addf %2, %4 : vector<64x50xf32>
    %cst_5 = arith.constant 0.000000e+00 : f32
    %6 = vector.broadcast %cst_5 : f32 to vector<64x50xf32>
    %7 = arith.maximumf %5, %6 : vector<64x50xf32>
    %c0_6 = arith.constant 0 : index
    %c0_7 = arith.constant 0 : index
    %8 = vector.load %arg4[%c0_6, %c0_7] : memref<1x50xf32, #tpu.memory_space<vmem>>, vector<1x50xf32>
    %cst_8 = arith.constant dense<0.000000e+00> : vector<1x64xf32>
    %9 = tpu.matmul %8, %7, %cst_8 {dimension_numbers = #tpu.dot_dimension_numbers<[1], [1], [0], [0], [0, 0, 1, 0], [], []>} : vector<1x50xf32>, vector<64x50xf32>, vector<1x64xf32> -> vector<1x64xf32>
    %c0_9 = arith.constant 0 : index
    %c0_10 = arith.constant 0 : index
    %10 = memref.load %arg5[%c0_9, %c0_10] : memref<1x1xf32, #tpu.memory_space<smem>>
    %11 = vector.broadcast %10 : f32 to vector<1x64xf32>
    %12 = arith.addf %9, %11 : vector<1x64xf32>
    %13 = arith.negf %12 : vector<1x64xf32>
    %14 = math.exp %13 : vector<1x64xf32>
    %cst_11 = arith.constant 1.000000e+00 : f32
    %15 = vector.broadcast %cst_11 : f32 to vector<1x64xf32>
    %16 = arith.addf %15, %14 : vector<1x64xf32>
    %17 = arith.divf %15, %16 : vector<1x64xf32>
    %c0_12 = arith.constant 0 : index
    %c0_13 = arith.constant 0 : index
    %18 = vector.load %arg6[%c0_12, %c0_13] : memref<1x64xf32, #tpu.memory_space<vmem>>, vector<1x64xf32>
    tpu.vector_store %arg6[%c0_12, %c0_13], %17 {strides = array<i32>} : memref<1x64xf32, #tpu.memory_space<vmem>>, vector<1x64xf32>,
    return
  }
  func.func @transform_0(%arg0: i32) -> (i32, i32) {
    %c0_i32 = arith.constant 0 : i32
    %c0_i32_0 = arith.constant 0 : i32
    return %arg0, %c0_i32 : i32, i32
  }
  func.func @transform_1(%arg0: i32) -> (i32, i32) {
    %c0_i32 = arith.constant 0 : i32
    %c0_i32_0 = arith.constant 0 : i32
    %c0_i32_1 = arith.constant 0 : i32
    return %c0_i32, %c0_i32_0 : i32, i32
  }
  func.func @transform_2(%arg0: i32) -> (i32, i32) {
    %c0_i32 = arith.constant 0 : i32
    %c0_i32_0 = arith.constant 0 : i32
    %c0_i32_1 = arith.constant 0 : i32
    return %c0_i32, %c0_i32_0 : i32, i32
  }
  func.func @transform_3(%arg0: i32) -> (i32, i32) {
    %c0_i32 = arith.constant 0 : i32
    %c0_i32_0 = arith.constant 0 : i32
    %c0_i32_1 = arith.constant 0 : i32
    return %c0_i32, %c0_i32_0 : i32, i32
  }
  func.func @transform_4(%arg0: i32) -> (i32, i32) {
    %c0_i32 = arith.constant 0 : i32
    %c0_i32_0 = arith.constant 0 : i32
    %c0_i32_1 = arith.constant 0 : i32
    return %c0_i32, %c0_i32_0 : i32, i32
  }
  func.func @transform_5(%arg0: i32) -> (i32, i32) {
    %c0_i32 = arith.constant 0 : i32
    %c0_i32_0 = arith.constant 0 : i32
    return %c0_i32, %arg0 : i32, i32
  }
}

</mosaic_0001>

<bundles_post_ra>
// kernel: simple_nn.1
= control target key start
LH: loop header
LB: loop body
LE: loop exit
PB: predicated region body
PF: predicated region fallthrough
CT: control target
= control target key end

     0   :  { %vm64_vm0 = vcmask 1041408   ;;  %vm433_vm1 = vmmov 1   ;;  %vm39_vm3 = vcmask 80896   ;;  %s542_s0 = inlined_call_operand.vmem [shape: f32[64,10], index: 0, kind: input, shape index: {}]   ;;  %s543_s1 = inlined_call_operand.vmem [shape: f32[10,50], index: 1, kind: input, shape index: {}]   ;;  %s544_s2 = inlined_call_operand.vmem [shape: f32[1,50], index: 2, kind: input, shape index: {}]   ;;  %s545_s3 = inlined_call_operand.vmem [shape: f32[1,50], index: 3, kind: input, shape index: {}]   ;;  %s546_s4 = inlined_call_operand.<no memory space> [shape: f32[1,1], index: 4, kind: input, shape index: {}]   ;;  %s547_s5 = inlined_call_operand.hbm [shape: f32[1,64], index: 5, kind: output, shape index: {}]  }
   0x1   :  { %v30_v0 = vld [vmem:[%s543_s1] sm:$0xff]  ;;  %v31_v1 = vld [vmem:[%s543_s1 + $0x8] sm:$0x3]  ;;  %vm379_vm2 = vmpackc.low %vm64_vm0, %vm433_vm1 }
   0x2   :  { %v22_v2 = vld [vmem:[%s542_s0] sm:$0xff]  ;;  %v378_v3 = vpack.c.bf16 %v31_v1, %v30_v0 }
   0x3   :  { %347 = vmatprep.mubr.msk.f32.mxu0 %vm39_vm3, %v22_v2 }
   0x4   :  { %380 = vmatprep.subr.msk.bf16.mxu0 %vm379_vm2, %v378_v3 }
   0x5   :  { %11 = vsyncpa [#allocation4], 0  ;;  %383 = vmatpush3.bf16.msk.msra.mxu0 %vm379_vm2, %v378_v3  ;;  %v23_v4 = vld [vmem:[%s542_s0 + $0x8] sm:$0xff]  ;;  %v24_v5 = vld [vmem:[%s542_s0 + $0x10] sm:$0xff]  ;;  %v434_v11 = vmov 0.0|0.0   ;;  %vm435_vm4 = vmmov 0   ;;  %v183_v44 = vstv %s546_s4 }
   0x6   :  { %v25_v6 = vld [vmem:[%s542_s0 + $0x18] sm:$0xff]  ;;  %v26_v7 = vld [vmem:[%s542_s0 + $0x20] sm:$0xff]  ;;  %v27_v8 = vld [vmem:[%s542_s0 + $0x28] sm:$0xff]  ;;  %384 = vmatprep.subr.bf16.mxu1 %v434_v11  ;;  %v436_v12 = vmov 0.0   ;;  %vm184_vm5 = vcmask 408576   ;;  %s437_s16 = smov [#allocation3]  }
   0x7   :  { %v28_v9 = vld [vmem:[%s542_s0 + $0x30] sm:$0xff]  ;;  %v29_v10 = vld [vmem:[%s542_s0 + $0x38] sm:$0xff]  ;;  %375 = vmatprep.mubr.msk.f32.mxu1 %vm435_vm4, %v436_v12  ;;  %v304_v13 = vld [vmem:[%s544_s2] ss:$0 sm:$0xff]  ;;  %s296_s17 = sshll.u32 %s437_s16, 4  ;;  %vm288_vm7 = vcmask 516096   ;;  %s297_s17 = int_to_ptr.vmem [resolvable:$true] %s296_s17 }
   0x8   :  { %348 = vmatmul.mubr.msk.f32.vlgmr.msra.gmra.mrb[0].mxu0 %vm39_vm3, %v23_v4  ;;  %vm511_vm6 = vmpackc.low %vm184_vm5, %vm184_vm5  ;;  %v181_v43 = vld [vmem:[%s545_s3] sm:$0x1]  ;;  %s409_s3 = scalar_lea.vmem %s297_s17, 16  ;;  %s413_s18 = scalar_lea.vmem %s297_s17, 32 }
   0x9   :  { %350 = vmatprep.mubr.msk.f32.mxu0 %vm39_vm3, %v24_v5  ;;  %p410_p0 = scmp.ne.s32.totalorder %s297_s17, %s409_s3  ;;  %p414_p1 = scmp.lt.s32.totalorder %s297_s17, %s297_s17 }
   0xa   :  { %p415_p2 = scmp.lt.s32.totalorder %s413_s18, %s409_s3 }
   0xc   :  { %351 = vmatmul.mubr.msk.f32.gmra.mrb[2].mxu0 %vm39_vm3, %v25_v6  ;;  %p416_p3 = por %p415_p2, %p414_p1 }
   0xd   :  { %353 = vmatprep.mubr.msk.f32.mxu0 %vm39_vm3, %v26_v7 }
   0xe   :  { %p417_p4 = pnand %p416_p3, %p410_p0 }
  0x10   :  { %354 = vmatmul.mubr.msk.f32.gmra.mrb[4].mxu0 %vm39_vm3, %v27_v8 }
  0x11   :  { %356 = vmatprep.mubr.msk.f32.mxu0 %vm39_vm3, %v28_v9 }
  0x14   :  { %357 = vmatmul.mubr.msk.f32.gmra.mrb[6].mxu0 %vm39_vm3, %v29_v10 }
  0xdb   :  { %v349_v14 = vpop.f32.mrb[0].mxu0 }
  0xdc   :  { %v140_v15 = vadd.f32 %v349_v14, %v304_v13  ;;  %v134_v16 = vpop.f32.mrb[1].mxu0 }
  0xdd   :  { %v135_v17 = vadd.f32 %v304_v13, %v134_v16 }
  0xde   :  { %v174_v18 = vmax.f32 %v140_v15, 0.0 }
  0xdf   :  { %v173_v19 = vmax.f32 %v135_v17, 0.0  ;;  %v352_v20 = vpop.f32.mrb[2].mxu0 }
  0xe0   :  { %v150_v21 = vadd.f32 %v352_v20, %v304_v13  ;;  %v144_v22 = vpop.f32.mrb[3].mxu0 }
  0xe1   :  { %v385_v24 = vpack.c.bf16 %v174_v18, %v173_v19  ;;  %v145_v25 = vadd.f32 %v304_v13, %v144_v22 }
  0xe2   :  { %v176_v26 = vmax.f32 %v150_v21, 0.0 }
  0xe3   :  { %v175_v27 = vmax.f32 %v145_v25, 0.0  ;;  %387 = vmatpush3.bf16.xpose.msk.msra.mxu1 %vm511_vm6, %v385_v24  ;;  %v355_v28 = vpop.f32.mrb[4].mxu0 }
  0xe4   :  { %v160_v29 = vadd.f32 %v355_v28, %v304_v13  ;;  %388 = vmatprep.subr.bf16.mxu1 %v434_v11  ;;  %v154_v30 = vpop.f32.mrb[5].mxu0 }
  0xe5   :  { %v389_v31 = vpack.c.bf16 %v176_v26, %v175_v27  ;;  %v155_v32 = vadd.f32 %v304_v13, %v154_v30 }
  0xe6   :  { %v178_v33 = vmax.f32 %v160_v29, 0.0 }
  0xe7   :  { %v177_v34 = vmax.f32 %v155_v32, 0.0  ;;  %v358_v35 = vpop.f32.mrb[6].mxu0 }
  0xe8   :  { %v170_v36 = vadd.f32 %v358_v35, %v304_v13  ;;  %v164_v37 = vpop.f32.mrb[7].mxu0 }
  0xe9   :  { %v393_v38 = vpack.c.bf16 %v178_v33, %v177_v34  ;;  %v165_v39 = vadd.f32 %v304_v13, %v164_v37 }
  0xea   :  { %v180_v40 = vmax.f32 %v170_v36, 0.0 }
  0xeb   :  { %391 = vmatpush3.bf16.xpose.msk.msra.mxu1 %vm511_vm6, %v389_v31  ;;  %v179_v41 = vmax.f32 %v165_v39, 0.0 }
  0xec   :  { %392 = vmatprep.subr.bf16.mxu1 %v434_v11 }
  0xed   :  { %v397_v42 = vpack.c.bf16 %v180_v40, %v179_v41 }
  0xf3   :  { %395 = vmatpush3.bf16.xpose.msk.msra.mxu1 %vm511_vm6, %v393_v38 }
  0xf4   :  { %396 = vmatprep.subr.bf16.mxu1 %v434_v11 }
  0xfb   :  { %399 = vmatpush3.bf16.xpose.msk.msra.mxu1 %vm511_vm6, %v397_v42 }
 0x102   :  { %376 = vmatmul.mubr.msk.f32.vlgmr.msra.gmra.mrb[0].mxu1 %vm184_vm5, %v181_v43 }
 0x1d5   :  { %v278_v45 = vpop.f32.mrb[0].mxu1 }
 0x1d6   :  { %v279_v46 = vadd.f32 %v278_v45, %v183_v44  ;;  %v377_v47 = vpop.f32.mrb[1].mxu1 }
 0x1d8   :  { %v323_v48 = vmul.f32 -1.442695, %v279_v46 }
 0x1da   :  { %405 = vpow2.f32 %v323_v48 }
 0x1e4   :  { %v406_v49 = vpop.eup %405 }
 0x1e5   :  { %v285_v50 = vadd.f32 1.0, %v406_v49 }
 0x1e7   :  { %407 = vrcp.f32 %v285_v50 }
 0x1f1   :  { %v408_v51 = vpop.eup %407 }
 0x1f2   :  { %289 = vst.msk [vmem:[#allocation3] sm:$0x1] %vm288_vm7, %v408_v51 }
 0x1f3   :  { %420 = shalt.err (!%p417_p4)
}
 0x1f4   :  { %s421_s20 = scalar_lea.hbm %s547_s5, 16 }
 0x1f5   :  { %p422_p5 = scmp.ne.s32.totalorder %s547_s5, %s421_s20  ;;  %p425_p6 = scmp.lt.u32.totalorder %s421_s20, %s547_s5 }
 0x1f7   :  { %p427_p7 = pnand %p425_p6, %p422_p5 }
 0x1f9   :  { %430 = shalt.err (!%p427_p7)
}
 0x1fa   :  { %299 = dma.vmem_to_hbm [thread:$0]  %s297_s17, 16, %s547_s5, [#allocation4]  }
 0x1fb   :  { %431 = dma.done.wait [#allocation4], 16  }
 0x1fc   :  { %432 = vsyncadd [#allocation4], 4294967280 }
 0x1fd   :  { %303 = vsyncpa [#allocation4], 1 }

</bundles_post_ra>
